<compile_context>
chip_gen: v7x
topology: tpu7x:2x2x1
jax: 0.10.0
libtpu: 0.0.40
codegen_flags: <defaults>
</compile_context>

<pallas_src>
import functools

import jax
import jax.numpy as jnp
import numpy as np
from jax import lax
from jax.experimental import pallas as pl
from jax.experimental.pallas import tpu as pltpu


# ----------------------------- Pallas kernel -------------------------------

def fasttext_gather_pool_kernel(tok_ref, table_ref, bias_ref, out_ref, *,
                                tb, seq_len):
    """Fused embedding-gather + mean-pool (pre-folded with fc) + bias.

    tok_ref   : SMEM int32 [B_pad, T]      token ids (scalar prefetch)
    table_ref : VMEM f32   [V_pad, L_pad]  (embedding @ W_fc^T) / T, resident
    bias_ref  : VMEM f32   [1, L_pad]      fc bias, resident
    out_ref   : VMEM f32   [TB, L_pad]     logits tile (lane-dense store)
    """
    i = pl.program_id(0)
    bias = bias_ref[...]                                    # [1, L_pad]

    # Static unroll over the (small) batch tile: each row gets an independent
    # accumulation chain and a static, lane-dense row store.
    # (At production TB >= 32, switch this to lax.fori_loop with a dynamic
    #  row store to bound trace size.)
    for b in range(tb):
        def tok_body(t, acc, _row=i * tb + b):
            tok = tok_ref[_row, t]                          # scalar SMEM read
            return acc + table_ref[pl.ds(tok, 1), :]        # [1, L_pad] row
        pooled = lax.fori_loop(0, seq_len, tok_body, bias, unroll=True)
        out_ref[pl.ds(b, 1), :] = pooled.astype(out_ref.dtype)


# ------------------------------ host wrapper --------------------------------

def fasttext_forward(tokens, params):
    """tokens: int32 [B, T]. Returns {'logits': [B, num_labels]}."""
    emb = params["embedding"]              # [V, E]
    w_fc_t = params["w_fc_t"]              # [E, L]  (PyTorch fc.weight, transposed)
    b_fc = params["b_fc"]                  # [1, L]

    B, T = tokens.shape
    V, E = emb.shape
    L = w_fc_t.shape[1]

    # Lane-dense output: exactly 128 unless num_labels > 128.
    L_pad = max(128, ((L + 127) // 128) * 128)
    # Fused-table rows padded to the f32 sublane count.
    V_pad = ((V + 7) // 8) * 8

    # Batch tile: multiple of 8 sublanes; one grid step per tile.
    TB = 8                                  # raise toward 128+ at real batch sizes
    B_pad = max(TB, ((B + TB - 1) // TB) * TB)
    grid = (B_pad // TB,)

    # One-time parameter fold: pool and fc commute, dropout is identity.
    table = (emb.astype(jnp.float32) @ w_fc_t.astype(jnp.float32)) * (1.0 / T)
    table = jnp.pad(table, ((0, V_pad - V), (0, L_pad - L)))        # [V_pad, L_pad]
    bias = jnp.pad(b_fc.astype(jnp.float32), ((0, 0), (0, L_pad - L)))

    # Only the tiny int32 token array is padded (padded rows index token 0;
    # their finite garbage logits are sliced off below).
    tok_pad = jnp.pad(tokens.astype(jnp.int32), ((0, B_pad - B), (0, 0)))

    kernel = functools.partial(fasttext_gather_pool_kernel, tb=TB, seq_len=T)

    logits_p = pl.pallas_call(
        kernel,
        out_shape=jax.ShapeDtypeStruct((B_pad, L_pad), jnp.float32),
        grid_spec=pltpu.PrefetchScalarGridSpec(
            num_scalar_prefetch=1,                       # tokens -> SMEM
            grid=grid,
            in_specs=[
                pl.BlockSpec((V_pad, L_pad), lambda i, toks: (0, 0)),  # table (resident)
                pl.BlockSpec((1, L_pad), lambda i, toks: (0, 0)),      # bias  (resident)
            ],
            out_specs=pl.BlockSpec((TB, L_pad), lambda i, toks: (i, 0)),
        ),
        compiler_params=pltpu.CompilerParams(
            dimension_semantics=("parallel",)),          # megacore on v7x
    )(tok_pad, table, bias)

    return {"logits": logits_p[:B, :L]}


# --------------------------- pure-JAX reference -----------------------------

def fasttext_reference(tokens, params):
    x_emb = jnp.take(params["embedding"], tokens, axis=0).astype(jnp.float32)
    pooled = jnp.mean(x_emb, axis=1)                     # avg_pool2d over T
    return pooled @ params["w_fc_t"].astype(jnp.float32) + params["b_fc"][0]


# --------------------------------- main -------------------------------------

if __name__ == "__main__":
    B, T = 2, 8          # batch, sequence length
    V, E = 64, 32        # vocab size, embedding_dim
    L = 4                # num_labels

    key = jax.random.PRNGKey(0)
    k_emb, k_fw, k_fb, k_tok = jax.random.split(key, 4)

    params = {
        # nn.Embedding.from_pretrained weight (synthetic, deterministic).
        "embedding": jax.random.uniform(k_emb, (V, E), jnp.float32, -0.1, 0.1),
        # fc: Linear(embedding_dim, num_labels), weight pre-transposed.
        "w_fc_t": jax.random.uniform(k_fw, (E, L), jnp.float32, -0.1, 0.1),
        "b_fc": jax.random.uniform(k_fb, (1, L), jnp.float32, -0.1, 0.1),
        # TODO(synk): nn.Dropout(FastText_drop_rate) is identity at inference
        # and therefore has no kernel-side op.
    }

    tokens = jax.random.randint(k_tok, (B, T), 0, V, dtype=jnp.int32)

    out = fasttext_forward(tokens, params)
    logits = jax.block_until_ready(out["logits"])

    ref = jax.block_until_ready(fasttext_reference(tokens, params))
    np.testing.assert_allclose(np.asarray(logits), np.asarray(ref),
                               rtol=1e-4, atol=1e-4)
    assert logits.shape == (B, L)
    print("KERNEL_OK")
</pallas_src>

<mosaic_0001>
module attributes {stable_mosaic.version = 11 : i64} {
  func.func @fasttext_gather_pool_kernel(%arg0: i32, %arg1: memref<8x8xi32, #tpu.memory_space<smem>>, %arg2: memref<64x128xf32, #tpu.memory_space<vmem>>, %arg3: memref<1x128xf32, #tpu.memory_space<vmem>>, %arg4: memref<8x128xf32, #tpu.memory_space<vmem>>) attributes {dimension_semantics = [#tpu.dimension_semantics<parallel>], iteration_bounds = array<i64: 1>, scalar_prefetch = 1 : i64, scratch_operands = 0 : i64, tpu.core_type = #tpu.core_type<tc>, window_params = [{pipeline_mode = #tpu.pipeline_mode<synchronous>, transform_indices = @transform_0, window_bounds = array<i64: 64, 128>}, {pipeline_mode = #tpu.pipeline_mode<synchronous>, transform_indices = @transform_1, window_bounds = array<i64: 1, 128>}, {transform_indices = @transform_2, window_bounds = array<i64: 8, 128>}]} {
    %c0 = arith.constant 0 : index
    %c0_0 = arith.constant 0 : index
    %0 = vector.load %arg3[%c0, %c0_0] : memref<1x128xf32, #tpu.memory_space<vmem>>, vector<1x128xf32>
    %c8_i32 = arith.constant 8 : i32
    %1 = arith.muli %arg0, %c8_i32 : i32
    %c0_i32 = arith.constant 0 : i32
    %2 = arith.addi %1, %c0_i32 : i32
    %c0_i32_1 = arith.constant 0 : i32
    %3 = arith.index_cast %2 : i32 to index
    %4 = arith.index_cast %c0_i32_1 : i32 to index
    %5 = memref.load %arg1[%3, %4] : memref<8x8xi32, #tpu.memory_space<smem>>
    %6 = arith.index_cast %5 : i32 to index
    %c0_2 = arith.constant 0 : index
    %7 = vector.load %arg2[%6, %c0_2] : memref<64x128xf32, #tpu.memory_space<vmem>>, vector<1x128xf32>
    %8 = arith.addf %0, %7 : vector<1x128xf32>
    %c1_i32 = arith.constant 1 : i32
    %9 = arith.index_cast %2 : i32 to index
    %10 = arith.index_cast %c1_i32 : i32 to index
    %11 = memref.load %arg1[%9, %10] : memref<8x8xi32, #tpu.memory_space<smem>>
    %12 = arith.index_cast %11 : i32 to index
    %c0_3 = arith.constant 0 : index
    %13 = vector.load %arg2[%12, %c0_3] : memref<64x128xf32, #tpu.memory_space<vmem>>, vector<1x128xf32>
    %14 = arith.addf %8, %13 : vector<1x128xf32>
    %c2_i32 = arith.constant 2 : i32
    %15 = arith.index_cast %2 : i32 to index
    %16 = arith.index_cast %c2_i32 : i32 to index
    %17 = memref.load %arg1[%15, %16] : memref<8x8xi32, #tpu.memory_space<smem>>
    %18 = arith.index_cast %17 : i32 to index
    %c0_4 = arith.constant 0 : index
    %19 = vector.load %arg2[%18, %c0_4] : memref<64x128xf32, #tpu.memory_space<vmem>>, vector<1x128xf32>
    %20 = arith.addf %14, %19 : vector<1x128xf32>
    %c3_i32 = arith.constant 3 : i32
    %21 = arith.index_cast %2 : i32 to index
    %22 = arith.index_cast %c3_i32 : i32 to index
    %23 = memref.load %arg1[%21, %22] : memref<8x8xi32, #tpu.memory_space<smem>>
    %24 = arith.index_cast %23 : i32 to index
    %c0_5 = arith.constant 0 : index
    %25 = vector.load %arg2[%24, %c0_5] : memref<64x128xf32, #tpu.memory_space<vmem>>, vector<1x128xf32>
    %26 = arith.addf %20, %25 : vector<1x128xf32>
    %c4_i32 = arith.constant 4 : i32
    %27 = arith.index_cast %2 : i32 to index
    %28 = arith.index_cast %c4_i32 : i32 to index
    %29 = memref.load %arg1[%27, %28] : memref<8x8xi32, #tpu.memory_space<smem>>
    %30 = arith.index_cast %29 : i32 to index
    %c0_6 = arith.constant 0 : index
    %31 = vector.load %arg2[%30, %c0_6] : memref<64x128xf32, #tpu.memory_space<vmem>>, vector<1x128xf32>
    %32 = arith.addf %26, %31 : vector<1x128xf32>
    %c5_i32 = arith.constant 5 : i32
    %33 = arith.index_cast %2 : i32 to index
    %34 = arith.index_cast %c5_i32 : i32 to index
    %35 = memref.load %arg1[%33, %34] : memref<8x8xi32, #tpu.memory_space<smem>>
    %36 = arith.index_cast %35 : i32 to index
    %c0_7 = arith.constant 0 : index
    %37 = vector.load %arg2[%36, %c0_7] : memref<64x128xf32, #tpu.memory_space<vmem>>, vector<1x128xf32>
    %38 = arith.addf %32, %37 : vector<1x128xf32>
    %c6_i32 = arith.constant 6 : i32
    %39 = arith.index_cast %2 : i32 to index
    %40 = arith.index_cast %c6_i32 : i32 to index
    %41 = memref.load %arg1[%39, %40] : memref<8x8xi32, #tpu.memory_space<smem>>
    %42 = arith.index_cast %41 : i32 to index
    %c0_8 = arith.constant 0 : index
    %43 = vector.load %arg2[%42, %c0_8] : memref<64x128xf32, #tpu.memory_space<vmem>>, vector<1x128xf32>
    %44 = arith.addf %38, %43 : vector<1x128xf32>
    %c7_i32 = arith.constant 7 : i32
    %45 = arith.index_cast %2 : i32 to index
    %46 = arith.index_cast %c7_i32 : i32 to index
    %47 = memref.load %arg1[%45, %46] : memref<8x8xi32, #tpu.memory_space<smem>>
    %48 = arith.index_cast %47 : i32 to index
    %c0_9 = arith.constant 0 : index
    %49 = vector.load %arg2[%48, %c0_9] : memref<64x128xf32, #tpu.memory_space<vmem>>, vector<1x128xf32>
    %50 = arith.addf %44, %49 : vector<1x128xf32>
    %c8_i32_10 = arith.constant 8 : i32
    %c0_11 = arith.constant 0 : index
    %c0_12 = arith.constant 0 : index
    %51 = vector.load %arg4[%c0_11, %c0_12] : memref<8x128xf32, #tpu.memory_space<vmem>>, vector<1x128xf32>
    tpu.vector_store %arg4[%c0_11, %c0_12], %50 {strides = array<i32>} : memref<8x128xf32, #tpu.memory_space<vmem>>, vector<1x128xf32>,
    %c8_i32_13 = arith.constant 8 : i32
    %52 = arith.muli %arg0, %c8_i32_13 : i32
    %c1_i32_14 = arith.constant 1 : i32
    %53 = arith.addi %52, %c1_i32_14 : i32
    %c0_i32_15 = arith.constant 0 : i32
    %54 = arith.index_cast %53 : i32 to index
    %55 = arith.index_cast %c0_i32_15 : i32 to index
    %56 = memref.load %arg1[%54, %55] : memref<8x8xi32, #tpu.memory_space<smem>>
    %57 = arith.index_cast %56 : i32 to index
    %c0_16 = arith.constant 0 : index
    %58 = vector.load %arg2[%57, %c0_16] : memref<64x128xf32, #tpu.memory_space<vmem>>, vector<1x128xf32>
    %59 = arith.addf %0, %58 : vector<1x128xf32>
    %c1_i32_17 = arith.constant 1 : i32
    %60 = arith.index_cast %53 : i32 to index
    %61 = arith.index_cast %c1_i32_17 : i32 to index
    %62 = memref.load %arg1[%60, %61] : memref<8x8xi32, #tpu.memory_space<smem>>
    %63 = arith.index_cast %62 : i32 to index
    %c0_18 = arith.constant 0 : index
    %64 = vector.load %arg2[%63, %c0_18] : memref<64x128xf32, #tpu.memory_space<vmem>>, vector<1x128xf32>
    %65 = arith.addf %59, %64 : vector<1x128xf32>
    %c2_i32_19 = arith.constant 2 : i32
    %66 = arith.index_cast %53 : i32 to index
    %67 = arith.index_cast %c2_i32_19 : i32 to index
    %68 = memref.load %arg1[%66, %67] : memref<8x8xi32, #tpu.memory_space<smem>>
    %69 = arith.index_cast %68 : i32 to index
    %c0_20 = arith.constant 0 : index
    %70 = vector.load %arg2[%69, %c0_20] : memref<64x128xf32, #tpu.memory_space<vmem>>, vector<1x128xf32>
    %71 = arith.addf %65, %70 : vector<1x128xf32>
    %c3_i32_21 = arith.constant 3 : i32
    %72 = arith.index_cast %53 : i32 to index
    %73 = arith.index_cast %c3_i32_21 : i32 to index
    %74 = memref.load %arg1[%72, %73] : memref<8x8xi32, #tpu.memory_space<smem>>
    %75 = arith.index_cast %74 : i32 to index
    %c0_22 = arith.constant 0 : index
    %76 = vector.load %arg2[%75, %c0_22] : memref<64x128xf32, #tpu.memory_space<vmem>>, vector<1x128xf32>
    %77 = arith.addf %71, %76 : vector<1x128xf32>
    %c4_i32_23 = arith.constant 4 : i32
    %78 = arith.index_cast %53 : i32 to index
    %79 = arith.index_cast %c4_i32_23 : i32 to index
    %80 = memref.load %arg1[%78, %79] : memref<8x8xi32, #tpu.memory_space<smem>>
    %81 = arith.index_cast %80 : i32 to index
    %c0_24 = arith.constant 0 : index
    %82 = vector.load %arg2[%81, %c0_24] : memref<64x128xf32, #tpu.memory_space<vmem>>, vector<1x128xf32>
    %83 = arith.addf %77, %82 : vector<1x128xf32>
    %c5_i32_25 = arith.constant 5 : i32
    %84 = arith.index_cast %53 : i32 to index
    %85 = arith.index_cast %c5_i32_25 : i32 to index
    %86 = memref.load %arg1[%84, %85] : memref<8x8xi32, #tpu.memory_space<smem>>
    %87 = arith.index_cast %86 : i32 to index
    %c0_26 = arith.constant 0 : index
    %88 = vector.load %arg2[%87, %c0_26] : memref<64x128xf32, #tpu.memory_space<vmem>>, vector<1x128xf32>
    %89 = arith.addf %83, %88 : vector<1x128xf32>
    %c6_i32_27 = arith.constant 6 : i32
    %90 = arith.index_cast %53 : i32 to index
    %91 = arith.index_cast %c6_i32_27 : i32 to index
    %92 = memref.load %arg1[%90, %91] : memref<8x8xi32, #tpu.memory_space<smem>>
    %93 = arith.index_cast %92 : i32 to index
    %c0_28 = arith.constant 0 : index
    %94 = vector.load %arg2[%93, %c0_28] : memref<64x128xf32, #tpu.memory_space<vmem>>, vector<1x128xf32>
    %95 = arith.addf %89, %94 : vector<1x128xf32>
    %c7_i32_29 = arith.constant 7 : i32
    %96 = arith.index_cast %53 : i32 to index
    %97 = arith.index_cast %c7_i32_29 : i32 to index
    %98 = memref.load %arg1[%96, %97] : memref<8x8xi32, #tpu.memory_space<smem>>
    %99 = arith.index_cast %98 : i32 to index
    %c0_30 = arith.constant 0 : index
    %100 = vector.load %arg2[%99, %c0_30] : memref<64x128xf32, #tpu.memory_space<vmem>>, vector<1x128xf32>
    %101 = arith.addf %95, %100 : vector<1x128xf32>
    %c8_i32_31 = arith.constant 8 : i32
    %c1 = arith.constant 1 : index
    %c0_32 = arith.constant 0 : index
    %102 = vector.load %arg4[%c1, %c0_32] : memref<8x128xf32, #tpu.memory_space<vmem>>, vector<1x128xf32>
    tpu.vector_store %arg4[%c1, %c0_32], %101 {strides = array<i32>} : memref<8x128xf32, #tpu.memory_space<vmem>>, vector<1x128xf32>,
    %c8_i32_33 = arith.constant 8 : i32
    %103 = arith.muli %arg0, %c8_i32_33 : i32
    %c2_i32_34 = arith.constant 2 : i32
    %104 = arith.addi %103, %c2_i32_34 : i32
    %c0_i32_35 = arith.constant 0 : i32
    %105 = arith.index_cast %104 : i32 to index
    %106 = arith.index_cast %c0_i32_35 : i32 to index
    %107 = memref.load %arg1[%105, %106] : memref<8x8xi32, #tpu.memory_space<smem>>
    %108 = arith.index_cast %107 : i32 to index
    %c0_36 = arith.constant 0 : index
    %109 = vector.load %arg2[%108, %c0_36] : memref<64x128xf32, #tpu.memory_space<vmem>>, vector<1x128xf32>
    %110 = arith.addf %0, %109 : vector<1x128xf32>
    %c1_i32_37 = arith.constant 1 : i32
    %111 = arith.index_cast %104 : i32 to index
    %112 = arith.index_cast %c1_i32_37 : i32 to index
    %113 = memref.load %arg1[%111, %112] : memref<8x8xi32, #tpu.memory_space<smem>>
    %114 = arith.index_cast %113 : i32 to index
    %c0_38 = arith.constant 0 : index
    %115 = vector.load %arg2[%114, %c0_38] : memref<64x128xf32, #tpu.memory_space<vmem>>, vector<1x128xf32>
    %116 = arith.addf %110, %115 : vector<1x128xf32>
    %c2_i32_39 = arith.constant 2 : i32
    %117 = arith.index_cast %104 : i32 to index
    %118 = arith.index_cast %c2_i32_39 : i32 to index
    %119 = memref.load %arg1[%117, %118] : memref<8x8xi32, #tpu.memory_space<smem>>
    %120 = arith.index_cast %119 : i32 to index
    %c0_40 = arith.constant 0 : index
    %121 = vector.load %arg2[%120, %c0_40] : memref<64x128xf32, #tpu.memory_space<vmem>>, vector<1x128xf32>
    %122 = arith.addf %116, %121 : vector<1x128xf32>
    %c3_i32_41 = arith.constant 3 : i32
    %123 = arith.index_cast %104 : i32 to index
    %124 = arith.index_cast %c3_i32_41 : i32 to index
    %125 = memref.load %arg1[%123, %124] : memref<8x8xi32, #tpu.memory_space<smem>>
    %126 = arith.index_cast %125 : i32 to index
    %c0_42 = arith.constant 0 : index
    %127 = vector.load %arg2[%126, %c0_42] : memref<64x128xf32, #tpu.memory_space<vmem>>, vector<1x128xf32>
    %128 = arith.addf %122, %127 : vector<1x128xf32>
    %c4_i32_43 = arith.constant 4 : i32
    %129 = arith.index_cast %104 : i32 to index
    %130 = arith.index_cast %c4_i32_43 : i32 to index
    %131 = memref.load %arg1[%129, %130] : memref<8x8xi32, #tpu.memory_space<smem>>
    %132 = arith.index_cast %131 : i32 to index
    %c0_44 = arith.constant 0 : index
    %133 = vector.load %arg2[%132, %c0_44] : memref<64x128xf32, #tpu.memory_space<vmem>>, vector<1x128xf32>
    %134 = arith.addf %128, %133 : vector<1x128xf32>
    %c5_i32_45 = arith.constant 5 : i32
    %135 = arith.index_cast %104 : i32 to index
    %136 = arith.index_cast %c5_i32_45 : i32 to index
    %137 = memref.load %arg1[%135, %136] : memref<8x8xi32, #tpu.memory_space<smem>>
    %138 = arith.index_cast %137 : i32 to index
    %c0_46 = arith.constant 0 : index
    %139 = vector.load %arg2[%138, %c0_46] : memref<64x128xf32, #tpu.memory_space<vmem>>, vector<1x128xf32>
    %140 = arith.addf %134, %139 : vector<1x128xf32>
    %c6_i32_47 = arith.constant 6 : i32
    %141 = arith.index_cast %104 : i32 to index
    %142 = arith.index_cast %c6_i32_47 : i32 to index
    %143 = memref.load %arg1[%141, %142] : memref<8x8xi32, #tpu.memory_space<smem>>
    %144 = arith.index_cast %143 : i32 to index
    %c0_48 = arith.constant 0 : index
    %145 = vector.load %arg2[%144, %c0_48] : memref<64x128xf32, #tpu.memory_space<vmem>>, vector<1x128xf32>
    %146 = arith.addf %140, %145 : vector<1x128xf32>
    %c7_i32_49 = arith.constant 7 : i32
    %147 = arith.index_cast %104 : i32 to index
    %148 = arith.index_cast %c7_i32_49 : i32 to index
    %149 = memref.load %arg1[%147, %148] : memref<8x8xi32, #tpu.memory_space<smem>>
    %150 = arith.index_cast %149 : i32 to index
    %c0_50 = arith.constant 0 : index
    %151 = vector.load %arg2[%150, %c0_50] : memref<64x128xf32, #tpu.memory_space<vmem>>, vector<1x128xf32>
    %152 = arith.addf %146, %151 : vector<1x128xf32>
    %c8_i32_51 = arith.constant 8 : i32
    %c2 = arith.constant 2 : index
    %c0_52 = arith.constant 0 : index
    %153 = vector.load %arg4[%c2, %c0_52] : memref<8x128xf32, #tpu.memory_space<vmem>>, vector<1x128xf32>
    tpu.vector_store %arg4[%c2, %c0_52], %152 {strides = array<i32>} : memref<8x128xf32, #tpu.memory_space<vmem>>, vector<1x128xf32>,
    %c8_i32_53 = arith.constant 8 : i32
    %154 = arith.muli %arg0, %c8_i32_53 : i32
    %c3_i32_54 = arith.constant 3 : i32
    %155 = arith.addi %154, %c3_i32_54 : i32
    %c0_i32_55 = arith.constant 0 : i32
    %156 = arith.index_cast %155 : i32 to index
    %157 = arith.index_cast %c0_i32_55 : i32 to index
    %158 = memref.load %arg1[%156, %157] : memref<8x8xi32, #tpu.memory_space<smem>>
    %159 = arith.index_cast %158 : i32 to index
    %c0_56 = arith.constant 0 : index
    %160 = vector.load %arg2[%159, %c0_56] : memref<64x128xf32, #tpu.memory_space<vmem>>, vector<1x128xf32>
    %161 = arith.addf %0, %160 : vector<1x128xf32>
    %c1_i32_57 = arith.constant 1 : i32
    %162 = arith.index_cast %155 : i32 to index
    %163 = arith.index_cast %c1_i32_57 : i32 to index
    %164 = memref.load %arg1[%162, %163] : memref<8x8xi32, #tpu.memory_space<smem>>
    %165 = arith.index_cast %164 : i32 to index
    %c0_58 = arith.constant 0 : index
    %166 = vector.load %arg2[%165, %c0_58] : memref<64x128xf32, #tpu.memory_space<vmem>>, vector<1x128xf32>
    %167 = arith.addf %161, %166 : vector<1x128xf32>
    %c2_i32_59 = arith.constant 2 : i32
    %168 = arith.index_cast %155 : i32 to index
    %169 = arith.index_cast %c2_i32_59 : i32 to index
    %170 = memref.load %arg1[%168, %169] : memref<8x8xi32, #tpu.memory_space<smem>>
    %171 = arith.index_cast %170 : i32 to index
    %c0_60 = arith.constant 0 : index
    %172 = vector.load %arg2[%171, %c0_60] : memref<64x128xf32, #tpu.memory_space<vmem>>, vector<1x128xf32>
    %173 = arith.addf %167, %172 : vector<1x128xf32>
    %c3_i32_61 = arith.constant 3 : i32
    %174 = arith.index_cast %155 : i32 to index
    %175 = arith.index_cast %c3_i32_61 : i32 to index
    %176 = memref.load %arg1[%174, %175] : memref<8x8xi32, #tpu.memory_space<smem>>
    %177 = arith.index_cast %176 : i32 to index
    %c0_62 = arith.constant 0 : index
    %178 = vector.load %arg2[%177, %c0_62] : memref<64x128xf32, #tpu.memory_space<vmem>>, vector<1x128xf32>
    %179 = arith.addf %173, %178 : vector<1x128xf32>
    %c4_i32_63 = arith.constant 4 : i32
    %180 = arith.index_cast %155 : i32 to index
    %181 = arith.index_cast %c4_i32_63 : i32 to index
    %182 = memref.load %arg1[%180, %181] : memref<8x8xi32, #tpu.memory_space<smem>>
    %183 = arith.index_cast %182 : i32 to index
    %c0_64 = arith.constant 0 : index
    %184 = vector.load %arg2[%183, %c0_64] : memref<64x128xf32, #tpu.memory_space<vmem>>, vector<1x128xf32>
    %185 = arith.addf %179, %184 : vector<1x128xf32>
    %c5_i32_65 = arith.constant 5 : i32
    %186 = arith.index_cast %155 : i32 to index
    %187 = arith.index_cast %c5_i32_65 : i32 to index
    %188 = memref.load %arg1[%186, %187] : memref<8x8xi32, #tpu.memory_space<smem>>
    %189 = arith.index_cast %188 : i32 to index
    %c0_66 = arith.constant 0 : index
    %190 = vector.load %arg2[%189, %c0_66] : memref<64x128xf32, #tpu.memory_space<vmem>>, vector<1x128xf32>
    %191 = arith.addf %185, %190 : vector<1x128xf32>
    %c6_i32_67 = arith.constant 6 : i32
    %192 = arith.index_cast %155 : i32 to index
    %193 = arith.index_cast %c6_i32_67 : i32 to index
    %194 = memref.load %arg1[%192, %193] : memref<8x8xi32, #tpu.memory_space<smem>>
    %195 = arith.index_cast %194 : i32 to index
    %c0_68 = arith.constant 0 : index
    %196 = vector.load %arg2[%195, %c0_68] : memref<64x128xf32, #tpu.memory_space<vmem>>, vector<1x128xf32>
    %197 = arith.addf %191, %196 : vector<1x128xf32>
    %c7_i32_69 = arith.constant 7 : i32
    %198 = arith.index_cast %155 : i32 to index
    %199 = arith.index_cast %c7_i32_69 : i32 to index
    %200 = memref.load %arg1[%198, %199] : memref<8x8xi32, #tpu.memory_space<smem>>
    %201 = arith.index_cast %200 : i32 to index
    %c0_70 = arith.constant 0 : index
    %202 = vector.load %arg2[%201, %c0_70] : memref<64x128xf32, #tpu.memory_space<vmem>>, vector<1x128xf32>
    %203 = arith.addf %197, %202 : vector<1x128xf32>
    %c8_i32_71 = arith.constant 8 : i32
    %c3 = arith.constant 3 : index
    %c0_72 = arith.constant 0 : index
    %204 = vector.load %arg4[%c3, %c0_72] : memref<8x128xf32, #tpu.memory_space<vmem>>, vector<1x128xf32>
    tpu.vector_store %arg4[%c3, %c0_72], %203 {strides = array<i32>} : memref<8x128xf32, #tpu.memory_space<vmem>>, vector<1x128xf32>,
    %c8_i32_73 = arith.constant 8 : i32
    %205 = arith.muli %arg0, %c8_i32_73 : i32
    %c4_i32_74 = arith.constant 4 : i32
    %206 = arith.addi %205, %c4_i32_74 : i32
    %c0_i32_75 = arith.constant 0 : i32
    %207 = arith.index_cast %206 : i32 to index
    %208 = arith.index_cast %c0_i32_75 : i32 to index
    %209 = memref.load %arg1[%207, %208] : memref<8x8xi32, #tpu.memory_space<smem>>
    %210 = arith.index_cast %209 : i32 to index
    %c0_76 = arith.constant 0 : index
    %211 = vector.load %arg2[%210, %c0_76] : memref<64x128xf32, #tpu.memory_space<vmem>>, vector<1x128xf32>
    %212 = arith.addf %0, %211 : vector<1x128xf32>
    %c1_i32_77 = arith.constant 1 : i32
    %213 = arith.index_cast %206 : i32 to index
    %214 = arith.index_cast %c1_i32_77 : i32 to index
    %215 = memref.load %arg1[%213, %214] : memref<8x8xi32, #tpu.memory_space<smem>>
    %216 = arith.index_cast %215 : i32 to index
    %c0_78 = arith.constant 0 : index
    %217 = vector.load %arg2[%216, %c0_78] : memref<64x128xf32, #tpu.memory_space<vmem>>, vector<1x128xf32>
    %218 = arith.addf %212, %217 : vector<1x128xf32>
    %c2_i32_79 = arith.constant 2 : i32
    %219 = arith.index_cast %206 : i32 to index
    %220 = arith.index_cast %c2_i32_79 : i32 to index
    %221 = memref.load %arg1[%219, %220] : memref<8x8xi32, #tpu.memory_space<smem>>
    %222 = arith.index_cast %221 : i32 to index
    %c0_80 = arith.constant 0 : index
    %223 = vector.load %arg2[%222, %c0_80] : memref<64x128xf32, #tpu.memory_space<vmem>>, vector<1x128xf32>
    %224 = arith.addf %218, %223 : vector<1x128xf32>
    %c3_i32_81 = arith.constant 3 : i32
    %225 = arith.index_cast %206 : i32 to index
    %226 = arith.index_cast %c3_i32_81 : i32 to index
    %227 = memref.load %arg1[%225, %226] : memref<8x8xi32, #tpu.memory_space<smem>>
    %228 = arith.index_cast %227 : i32 to index
    %c0_82 = arith.constant 0 : index
    %229 = vector.load %arg2[%228, %c0_82] : memref<64x128xf32, #tpu.memory_space<vmem>>, vector<1x128xf32>
    %230 = arith.addf %224, %229 : vector<1x128xf32>
    %c4_i32_83 = arith.constant 4 : i32
    %231 = arith.index_cast %206 : i32 to index
    %232 = arith.index_cast %c4_i32_83 : i32 to index
    %233 = memref.load %arg1[%231, %232] : memref<8x8xi32, #tpu.memory_space<smem>>
    %234 = arith.index_cast %233 : i32 to index
    %c0_84 = arith.constant 0 : index
    %235 = vector.load %arg2[%234, %c0_84] : memref<64x128xf32, #tpu.memory_space<vmem>>, vector<1x128xf32>
    %236 = arith.addf %230, %235 : vector<1x128xf32>
    %c5_i32_85 = arith.constant 5 : i32
    %237 = arith.index_cast %206 : i32 to index
    %238 = arith.index_cast %c5_i32_85 : i32 to index
    %239 = memref.load %arg1[%237, %238] : memref<8x8xi32, #tpu.memory_space<smem>>
    %240 = arith.index_cast %239 : i32 to index
    %c0_86 = arith.constant 0 : index
    %241 = vector.load %arg2[%240, %c0_86] : memref<64x128xf32, #tpu.memory_space<vmem>>, vector<1x128xf32>
    %242 = arith.addf %236, %241 : vector<1x128xf32>
    %c6_i32_87 = arith.constant 6 : i32
    %243 = arith.index_cast %206 : i32 to index
    %244 = arith.index_cast %c6_i32_87 : i32 to index
    %245 = memref.load %arg1[%243, %244] : memref<8x8xi32, #tpu.memory_space<smem>>
    %246 = arith.index_cast %245 : i32 to index
    %c0_88 = arith.constant 0 : index
    %247 = vector.load %arg2[%246, %c0_88] : memref<64x128xf32, #tpu.memory_space<vmem>>, vector<1x128xf32>
    %248 = arith.addf %242, %247 : vector<1x128xf32>
    %c7_i32_89 = arith.constant 7 : i32
    %249 = arith.index_cast %206 : i32 to index
    %250 = arith.index_cast %c7_i32_89 : i32 to index
    %251 = memref.load %arg1[%249, %250] : memref<8x8xi32, #tpu.memory_space<smem>>
    %252 = arith.index_cast %251 : i32 to index
    %c0_90 = arith.constant 0 : index
    %253 = vector.load %arg2[%252, %c0_90] : memref<64x128xf32, #tpu.memory_space<vmem>>, vector<1x128xf32>
    %254 = arith.addf %248, %253 : vector<1x128xf32>
    %c8_i32_91 = arith.constant 8 : i32
    %c4 = arith.constant 4 : index
    %c0_92 = arith.constant 0 : index
    %255 = vector.load %arg4[%c4, %c0_92] : memref<8x128xf32, #tpu.memory_space<vmem>>, vector<1x128xf32>
    tpu.vector_store %arg4[%c4, %c0_92], %254 {strides = array<i32>} : memref<8x128xf32, #tpu.memory_space<vmem>>, vector<1x128xf32>,
    %c8_i32_93 = arith.constant 8 : i32
    %256 = arith.muli %arg0, %c8_i32_93 : i32
    %c5_i32_94 = arith.constant 5 : i32
    %257 = arith.addi %256, %c5_i32_94 : i32
    %c0_i32_95 = arith.constant 0 : i32
    %258 = arith.index_cast %257 : i32 to index
    %259 = arith.index_cast %c0_i32_95 : i32 to index
    %260 = memref.load %arg1[%258, %259] : memref<8x8xi32, #tpu.memory_space<smem>>
    %261 = arith.index_cast %260 : i32 to index
    %c0_96 = arith.constant 0 : index
    %262 = vector.load %arg2[%261, %c0_96] : memref<64x128xf32, #tpu.memory_space<vmem>>, vector<1x128xf32>
    %263 = arith.addf %0, %262 : vector<1x128xf32>
    %c1_i32_97 = arith.constant 1 : i32
    %264 = arith.index_cast %257 : i32 to index
    %265 = arith.index_cast %c1_i32_97 : i32 to index
    %266 = memref.load %arg1[%264, %265] : memref<8x8xi32, #tpu.memory_space<smem>>
    %267 = arith.index_cast %266 : i32 to index
    %c0_98 = arith.constant 0 : index
    %268 = vector.load %arg2[%267, %c0_98] : memref<64x128xf32, #tpu.memory_space<vmem>>, vector<1x128xf32>
    %269 = arith.addf %263, %268 : vector<1x128xf32>
    %c2_i32_99 = arith.constant 2 : i32
    %270 = arith.index_cast %257 : i32 to index
    %271 = arith.index_cast %c2_i32_99 : i32 to index
    %272 = memref.load %arg1[%270, %271] : memref<8x8xi32, #tpu.memory_space<smem>>
    %273 = arith.index_cast %272 : i32 to index
    %c0_100 = arith.constant 0 : index
    %274 = vector.load %arg2[%273, %c0_100] : memref<64x128xf32, #tpu.memory_space<vmem>>, vector<1x128xf32>
    %275 = arith.addf %269, %274 : vector<1x128xf32>
    %c3_i32_101 = arith.constant 3 : i32
    %276 = arith.index_cast %257 : i32 to index
    %277 = arith.index_cast %c3_i32_101 : i32 to index
    %278 = memref.load %arg1[%276, %277] : memref<8x8xi32, #tpu.memory_space<smem>>
    %279 = arith.index_cast %278 : i32 to index
    %c0_102 = arith.constant 0 : index
    %280 = vector.load %arg2[%279, %c0_102] : memref<64x128xf32, #tpu.memory_space<vmem>>, vector<1x128xf32>
    %281 = arith.addf %275, %280 : vector<1x128xf32>
    %c4_i32_103 = arith.constant 4 : i32
    %282 = arith.index_cast %257 : i32 to index
    %283 = arith.index_cast %c4_i32_103 : i32 to index
    %284 = memref.load %arg1[%282, %283] : memref<8x8xi32, #tpu.memory_space<smem>>
    %285 = arith.index_cast %284 : i32 to index
    %c0_104 = arith.constant 0 : index
    %286 = vector.load %arg2[%285, %c0_104] : memref<64x128xf32, #tpu.memory_space<vmem>>, vector<1x128xf32>
    %287 = arith.addf %281, %286 : vector<1x128xf32>
    %c5_i32_105 = arith.constant 5 : i32
    %288 = arith.index_cast %257 : i32 to index
    %289 = arith.index_cast %c5_i32_105 : i32 to index
    %290 = memref.load %arg1[%288, %289] : memref<8x8xi32, #tpu.memory_space<smem>>
    %291 = arith.index_cast %290 : i32 to index
    %c0_106 = arith.constant 0 : index
    %292 = vector.load %arg2[%291, %c0_106] : memref<64x128xf32, #tpu.memory_space<vmem>>, vector<1x128xf32>
    %293 = arith.addf %287, %292 : vector<1x128xf32>
    %c6_i32_107 = arith.constant 6 : i32
    %294 = arith.index_cast %257 : i32 to index
    %295 = arith.index_cast %c6_i32_107 : i32 to index
    %296 = memref.load %arg1[%294, %295] : memref<8x8xi32, #tpu.memory_space<smem>>
    %297 = arith.index_cast %296 : i32 to index
    %c0_108 = arith.constant 0 : index
    %298 = vector.load %arg2[%297, %c0_108] : memref<64x128xf32, #tpu.memory_space<vmem>>, vector<1x128xf32>
    %299 = arith.addf %293, %298 : vector<1x128xf32>
    %c7_i32_109 = arith.constant 7 : i32
    %300 = arith.index_cast %257 : i32 to index
    %301 = arith.index_cast %c7_i32_109 : i32 to index
    %302 = memref.load %arg1[%300, %301] : memref<8x8xi32, #tpu.memory_space<smem>>
    %303 = arith.index_cast %302 : i32 to index
    %c0_110 = arith.constant 0 : index
    %304 = vector.load %arg2[%303, %c0_110] : memref<64x128xf32, #tpu.memory_space<vmem>>, vector<1x128xf32>
    %305 = arith.addf %299, %304 : vector<1x128xf32>
    %c8_i32_111 = arith.constant 8 : i32
    %c5 = arith.constant 5 : index
    %c0_112 = arith.constant 0 : index
    %306 = vector.load %arg4[%c5, %c0_112] : memref<8x128xf32, #tpu.memory_space<vmem>>, vector<1x128xf32>
    tpu.vector_store %arg4[%c5, %c0_112], %305 {strides = array<i32>} : memref<8x128xf32, #tpu.memory_space<vmem>>, vector<1x128xf32>,
    %c8_i32_113 = arith.constant 8 : i32
    %307 = arith.muli %arg0, %c8_i32_113 : i32
    %c6_i32_114 = arith.constant 6 : i32
    %308 = arith.addi %307, %c6_i32_114 : i32
    %c0_i32_115 = arith.constant 0 : i32
    %309 = arith.index_cast %308 : i32 to index
    %310 = arith.index_cast %c0_i32_115 : i32 to index
    %311 = memref.load %arg1[%309, %310] : memref<8x8xi32, #tpu.memory_space<smem>>
    %312 = arith.index_cast %311 : i32 to index
    %c0_116 = arith.constant 0 : index
    %313 = vector.load %arg2[%312, %c0_116] : memref<64x128xf32, #tpu.memory_space<vmem>>, vector<1x128xf32>
    %314 = arith.addf %0, %313 : vector<1x128xf32>
    %c1_i32_117 = arith.constant 1 : i32
    %315 = arith.index_cast %308 : i32 to index
    %316 = arith.index_cast %c1_i32_117 : i32 to index
    %317 = memref.load %arg1[%315, %316] : memref<8x8xi32, #tpu.memory_space<smem>>
    %318 = arith.index_cast %317 : i32 to index
    %c0_118 = arith.constant 0 : index
    %319 = vector.load %arg2[%318, %c0_118] : memref<64x128xf32, #tpu.memory_space<vmem>>, vector<1x128xf32>
    %320 = arith.addf %314, %319 : vector<1x128xf32>
    %c2_i32_119 = arith.constant 2 : i32
    %321 = arith.index_cast %308 : i32 to index
    %322 = arith.index_cast %c2_i32_119 : i32 to index
    %323 = memref.load %arg1[%321, %322] : memref<8x8xi32, #tpu.memory_space<smem>>
    %324 = arith.index_cast %323 : i32 to index
    %c0_120 = arith.constant 0 : index
    %325 = vector.load %arg2[%324, %c0_120] : memref<64x128xf32, #tpu.memory_space<vmem>>, vector<1x128xf32>
    %326 = arith.addf %320, %325 : vector<1x128xf32>
    %c3_i32_121 = arith.constant 3 : i32
    %327 = arith.index_cast %308 : i32 to index
    %328 = arith.index_cast %c3_i32_121 : i32 to index
    %329 = memref.load %arg1[%327, %328] : memref<8x8xi32, #tpu.memory_space<smem>>
    %330 = arith.index_cast %329 : i32 to index
    %c0_122 = arith.constant 0 : index
    %331 = vector.load %arg2[%330, %c0_122] : memref<64x128xf32, #tpu.memory_space<vmem>>, vector<1x128xf32>
    %332 = arith.addf %326, %331 : vector<1x128xf32>
    %c4_i32_123 = arith.constant 4 : i32
    %333 = arith.index_cast %308 : i32 to index
    %334 = arith.index_cast %c4_i32_123 : i32 to index
    %335 = memref.load %arg1[%333, %334] : memref<8x8xi32, #tpu.memory_space<smem>>
    %336 = arith.index_cast %335 : i32 to index
    %c0_124 = arith.constant 0 : index
    %337 = vector.load %arg2[%336, %c0_124] : memref<64x128xf32, #tpu.memory_space<vmem>>, vector<1x128xf32>
    %338 = arith.addf %332, %337 : vector<1x128xf32>
    %c5_i32_125 = arith.constant 5 : i32
    %339 = arith.index_cast %308 : i32 to index
    %340 = arith.index_cast %c5_i32_125 : i32 to index
    %341 = memref.load %arg1[%339, %340] : memref<8x8xi32, #tpu.memory_space<smem>>
    %342 = arith.index_cast %341 : i32 to index
    %c0_126 = arith.constant 0 : index
    %343 = vector.load %arg2[%342, %c0_126] : memref<64x128xf32, #tpu.memory_space<vmem>>, vector<1x128xf32>
    %344 = arith.addf %338, %343 : vector<1x128xf32>
    %c6_i32_127 = arith.constant 6 : i32
    %345 = arith.index_cast %308 : i32 to index
    %346 = arith.index_cast %c6_i32_127 : i32 to index
    %347 = memref.load %arg1[%345, %346] : memref<8x8xi32, #tpu.memory_space<smem>>
    %348 = arith.index_cast %347 : i32 to index
    %c0_128 = arith.constant 0 : index
    %349 = vector.load %arg2[%348, %c0_128] : memref<64x128xf32, #tpu.memory_space<vmem>>, vector<1x128xf32>
    %350 = arith.addf %344, %349 : vector<1x128xf32>
    %c7_i32_129 = arith.constant 7 : i32
    %351 = arith.index_cast %308 : i32 to index
    %352 = arith.index_cast %c7_i32_129 : i32 to index
    %353 = memref.load %arg1[%351, %352] : memref<8x8xi32, #tpu.memory_space<smem>>
    %354 = arith.index_cast %353 : i32 to index
    %c0_130 = arith.constant 0 : index
    %355 = vector.load %arg2[%354, %c0_130] : memref<64x128xf32, #tpu.memory_space<vmem>>, vector<1x128xf32>
    %356 = arith.addf %350, %355 : vector<1x128xf32>
    %c8_i32_131 = arith.constant 8 : i32
    %c6 = arith.constant 6 : index
    %c0_132 = arith.constant 0 : index
    %357 = vector.load %arg4[%c6, %c0_132] : memref<8x128xf32, #tpu.memory_space<vmem>>, vector<1x128xf32>
    tpu.vector_store %arg4[%c6, %c0_132], %356 {strides = array<i32>} : memref<8x128xf32, #tpu.memory_space<vmem>>, vector<1x128xf32>,
    %c8_i32_133 = arith.constant 8 : i32
    %358 = arith.muli %arg0, %c8_i32_133 : i32
    %c7_i32_134 = arith.constant 7 : i32
    %359 = arith.addi %358, %c7_i32_134 : i32
    %c0_i32_135 = arith.constant 0 : i32
    %360 = arith.index_cast %359 : i32 to index
    %361 = arith.index_cast %c0_i32_135 : i32 to index
    %362 = memref.load %arg1[%360, %361] : memref<8x8xi32, #tpu.memory_space<smem>>
    %363 = arith.index_cast %362 : i32 to index
    %c0_136 = arith.constant 0 : index
    %364 = vector.load %arg2[%363, %c0_136] : memref<64x128xf32, #tpu.memory_space<vmem>>, vector<1x128xf32>
    %365 = arith.addf %0, %364 : vector<1x128xf32>
    %c1_i32_137 = arith.constant 1 : i32
    %366 = arith.index_cast %359 : i32 to index
    %367 = arith.index_cast %c1_i32_137 : i32 to index
    %368 = memref.load %arg1[%366, %367] : memref<8x8xi32, #tpu.memory_space<smem>>
    %369 = arith.index_cast %368 : i32 to index
    %c0_138 = arith.constant 0 : index
    %370 = vector.load %arg2[%369, %c0_138] : memref<64x128xf32, #tpu.memory_space<vmem>>, vector<1x128xf32>
    %371 = arith.addf %365, %370 : vector<1x128xf32>
    %c2_i32_139 = arith.constant 2 : i32
    %372 = arith.index_cast %359 : i32 to index
    %373 = arith.index_cast %c2_i32_139 : i32 to index
    %374 = memref.load %arg1[%372, %373] : memref<8x8xi32, #tpu.memory_space<smem>>
    %375 = arith.index_cast %374 : i32 to index
    %c0_140 = arith.constant 0 : index
    %376 = vector.load %arg2[%375, %c0_140] : memref<64x128xf32, #tpu.memory_space<vmem>>, vector<1x128xf32>
    %377 = arith.addf %371, %376 : vector<1x128xf32>
    %c3_i32_141 = arith.constant 3 : i32
    %378 = arith.index_cast %359 : i32 to index
    %379 = arith.index_cast %c3_i32_141 : i32 to index
    %380 = memref.load %arg1[%378, %379] : memref<8x8xi32, #tpu.memory_space<smem>>
    %381 = arith.index_cast %380 : i32 to index
    %c0_142 = arith.constant 0 : index
    %382 = vector.load %arg2[%381, %c0_142] : memref<64x128xf32, #tpu.memory_space<vmem>>, vector<1x128xf32>
    %383 = arith.addf %377, %382 : vector<1x128xf32>
    %c4_i32_143 = arith.constant 4 : i32
    %384 = arith.index_cast %359 : i32 to index
    %385 = arith.index_cast %c4_i32_143 : i32 to index
    %386 = memref.load %arg1[%384, %385] : memref<8x8xi32, #tpu.memory_space<smem>>
    %387 = arith.index_cast %386 : i32 to index
    %c0_144 = arith.constant 0 : index
    %388 = vector.load %arg2[%387, %c0_144] : memref<64x128xf32, #tpu.memory_space<vmem>>, vector<1x128xf32>
    %389 = arith.addf %383, %388 : vector<1x128xf32>
    %c5_i32_145 = arith.constant 5 : i32
    %390 = arith.index_cast %359 : i32 to index
    %391 = arith.index_cast %c5_i32_145 : i32 to index
    %392 = memref.load %arg1[%390, %391] : memref<8x8xi32, #tpu.memory_space<smem>>
    %393 = arith.index_cast %392 : i32 to index
    %c0_146 = arith.constant 0 : index
    %394 = vector.load %arg2[%393, %c0_146] : memref<64x128xf32, #tpu.memory_space<vmem>>, vector<1x128xf32>
    %395 = arith.addf %389, %394 : vector<1x128xf32>
    %c6_i32_147 = arith.constant 6 : i32
    %396 = arith.index_cast %359 : i32 to index
    %397 = arith.index_cast %c6_i32_147 : i32 to index
    %398 = memref.load %arg1[%396, %397] : memref<8x8xi32, #tpu.memory_space<smem>>
    %399 = arith.index_cast %398 : i32 to index
    %c0_148 = arith.constant 0 : index
    %400 = vector.load %arg2[%399, %c0_148] : memref<64x128xf32, #tpu.memory_space<vmem>>, vector<1x128xf32>
    %401 = arith.addf %395, %400 : vector<1x128xf32>
    %c7_i32_149 = arith.constant 7 : i32
    %402 = arith.index_cast %359 : i32 to index
    %403 = arith.index_cast %c7_i32_149 : i32 to index
    %404 = memref.load %arg1[%402, %403] : memref<8x8xi32, #tpu.memory_space<smem>>
    %405 = arith.index_cast %404 : i32 to index
    %c0_150 = arith.constant 0 : index
    %406 = vector.load %arg2[%405, %c0_150] : memref<64x128xf32, #tpu.memory_space<vmem>>, vector<1x128xf32>
    %407 = arith.addf %401, %406 : vector<1x128xf32>
    %c8_i32_151 = arith.constant 8 : i32
    %c7 = arith.constant 7 : index
    %c0_152 = arith.constant 0 : index
    %408 = vector.load %arg4[%c7, %c0_152] : memref<8x128xf32, #tpu.memory_space<vmem>>, vector<1x128xf32>
    tpu.vector_store %arg4[%c7, %c0_152], %407 {strides = array<i32>} : memref<8x128xf32, #tpu.memory_space<vmem>>, vector<1x128xf32>,
    return
  }
  func.func @transform_0(%arg0: i32, %arg1: memref<8x8xi32, #tpu.memory_space<smem>>) -> (i32, i32) {
    %c0_i32 = arith.constant 0 : i32
    %c0_i32_0 = arith.constant 0 : i32
    %c0_i32_1 = arith.constant 0 : i32
    return %c0_i32, %c0_i32_0 : i32, i32
  }
  func.func @transform_1(%arg0: i32, %arg1: memref<8x8xi32, #tpu.memory_space<smem>>) -> (i32, i32) {
    %c0_i32 = arith.constant 0 : i32
    %c0_i32_0 = arith.constant 0 : i32
    %c0_i32_1 = arith.constant 0 : i32
    return %c0_i32, %c0_i32_0 : i32, i32
  }
  func.func @transform_2(%arg0: i32, %arg1: memref<8x8xi32, #tpu.memory_space<smem>>) -> (i32, i32) {
    %c0_i32 = arith.constant 0 : i32
    %c0_i32_0 = arith.constant 0 : i32
    return %arg0, %c0_i32 : i32, i32
  }
}

</mosaic_0001>

<bundles_post_ra>
// kernel: tpu_custom_call.1
= control target key start
LH: loop header
LB: loop body
LE: loop exit
PB: predicated region body
PF: predicated region fallthrough
CT: control target
= control target key end

     0   :  { %s775_s0 = inlined_call_operand.hbm [shape: s32[8,8], index: 0, kind: input, shape index: {}]   ;;  %s776_s1 = inlined_call_operand.hbm [shape: f32[64,128], index: 1, kind: input, shape index: {}]   ;;  %s777_s2 = inlined_call_operand.vmem [shape: f32[1,128], index: 2, kind: input, shape index: {}]   ;;  %s778_s3 = inlined_call_operand.hbm [shape: f32[8,128], index: 3, kind: output, shape index: {}]  }
   0x1   :  { %s515_s14 = scalar_lea.hbm %s775_s0, 128 }
   0x2   :  { %p516_p0 = scmp.ne.s32.totalorder %s775_s0, %s515_s14  ;;  %p519_p1 = scmp.lt.u32.totalorder %s515_s14, %s775_s0 }
   0x4   :  { %p521_p2 = pnand %p519_p1, %p516_p0 }
   0x6   :  { %524 = shalt.err (!%p521_p2)  }
   0x7   :  { %s575_s19 = smov [#allocation3]  }
   0x8   :  { %9 = dma.hbm_to_smem %s775_s0, 128, %s575_s19, [#allocation2] }
   0x9   :  { %569 = dma.done.wait [#allocation2], 128 }
   0xa   :  { %570 = vsyncadd [#allocation2], 4294967168 }
   0xb   :  { %11 = sfence }
   0xc   :  { %12 = vsyncpa [#allocation5], 0 }
   0xd   :  { %13 = vsyncpa [#allocation6], 0  ;;  %s576_s22 = smov [#allocation4]   ;;  %s525_s26 = scalar_lea.hbm %s776_s1, 1024 }
   0xe   :  { %s19_s23 = sshll.u32 %s576_s22, 4  ;;  %p526_p3 = scmp.ne.s32.totalorder %s776_s1, %s525_s26  ;;  %s20_s23 = int_to_ptr.vmem [resolvable:$true] %s19_s23 }
   0xf   :  { %p529_p4 = scmp.lt.u32.totalorder %s525_s26, %s776_s1 }
  0x11   :  { %p531_p5 = pnand %p529_p4, %p526_p3 }
  0x13   :  { %534 = shalt.err (!%p531_p5)
}
  0x14   :  { %s535_s0 = scalar_lea.vmem %s20_s23, 1024  ;;  %p540_p7 = scmp.lt.s32.totalorder %s20_s23, %s20_s23 }
  0x15   :  { %p536_p6 = scmp.ne.s32.totalorder %s20_s23, %s535_s0  ;;  %p541_p8 = scmp.lt.s32.totalorder %s535_s0, %s535_s0 }
  0x17   :  { %p542_p9 = por %p541_p8, %p540_p7 }
  0x19   :  { %p543_p10 = pnand %p542_p9, %p536_p6 }
  0x1b   :  { %546 = shalt.err (!%p543_p10)
}
  0x1c   :  { %s577_s4 = smov 128   ;;  %s578_s5 = smov 8  }
  0x1d   :  { %25 = dma.hbm_to_vmem [thread:$0]  %s776_s1, 1024, %s20_s23, [#allocation5], %s577_s4, %s577_s4, %s578_s5  }
  0x1e   :  { %571 = dma.done.wait [#allocation5], 1024  }
  0x1f   :  { %572 = vsyncadd [#allocation5], 4294966272  ;;  %s34_s8 = sld [smem:[#allocation3]]  ;;  %s447_s9 = sld [smem:[#allocation3 + $0x1]]  ;;  %v635_v0 = vld [vmem:[%s777_s2] sm:$0x1] }
  0x20   :  { %s448_s10 = sld [smem:[#allocation3 + $0x2]]  ;;  %s449_s11 = sld [smem:[#allocation3 + $0x3]] }
  0x21   :  { %s450_s12 = sld [smem:[#allocation3 + $0x4]]  ;;  %s624_s13 = sld [smem:[#allocation3 + $0x5]] }
  0x22   :  { %s626_s14 = sld [smem:[#allocation3 + $0x6]]  ;;  %s628_s15 = sld [smem:[#allocation3 + $0x7]] }
  0x23   :  { %s454_s16 = sld [smem:[#allocation3 + $0x80]]  ;;  %s455_s17 = sld [smem:[#allocation3 + $0x81]] }
  0x24   :  { %s456_s18 = sld [smem:[#allocation3 + $0x82]]  ;;  %s630_s19 = sld [smem:[#allocation3 + $0x83]] }
  0x25   :  { %s35_s21 = scalar_lea.vmem [#allocation4], %s34_s8  ;;  %s40_s22 = scalar_lea.vmem [#allocation4], %s447_s9 }
  0x26   :  { %v36_v1 = vld [vmem:[%s35_s21] sm:$0x1]  ;;  %s45_s23 = scalar_lea.vmem [#allocation4], %s448_s10  ;;  %s50_s24 = scalar_lea.vmem [#allocation4], %s449_s11 }
  0x27   :  { %v41_v2 = vld [vmem:[%s40_s22] sm:$0x1]  ;;  %v37_v3 = vadd.f32 %v36_v1, %v635_v0  ;;  %s55_s2 = scalar_lea.vmem [#allocation4], %s450_s12  ;;  %s639_s27 = sld [smem:[#allocation3 + $0x84]] }
  0x28   :  { %v46_v4 = vld [vmem:[%s45_s23] sm:$0x1]  ;;  %s641_s29 = sld [smem:[#allocation3 + $0x85]]  ;;  %s643_s30 = sld [smem:[#allocation3 + $0x86]] }
  0x29   :  { %v42_v5 = vadd.f32 %v41_v2, %v37_v3  ;;  %v51_v6 = vld [vmem:[%s50_s24] sm:$0x1]  ;;  %s77_s25 = scalar_lea.vmem [#allocation4], %s454_s16  ;;  %s82_s26 = scalar_lea.vmem [#allocation4], %s455_s17 }
  0x2a   :  { %v78_v7 = vld [vmem:[%s77_s25] sm:$0x1]  ;;  %s87_s28 = scalar_lea.vmem [#allocation4], %s456_s18  ;;  %s60_s0 = scalar_lea.vmem [#allocation4], %s624_s13 }
  0x2b   :  { %v83_v8 = vld [vmem:[%s82_s26] sm:$0x1]  ;;  %v47_v9 = vadd.f32 %v46_v4, %v42_v5  ;;  %v79_v11 = vadd.f32 %v78_v7, %v635_v0  ;;  %s646_s4 = sld [smem:[#allocation3 + $0x87]]  ;;  %s462_s5 = sld [smem:[#allocation3 + $0x100]] }
  0x2c   :  { %v56_v10 = vld [vmem:[%s55_s2] sm:$0x1]  ;;  %s92_s6 = scalar_lea.vmem [#allocation4], %s630_s19  ;;  %s649_s7 = sld [smem:[#allocation3 + $0x101]] }
  0x2d   :  { %v88_v12 = vld [vmem:[%s87_s28] sm:$0x1]  ;;  %v52_v13 = vadd.f32 %v51_v6, %v47_v9  ;;  %v84_v15 = vadd.f32 %v83_v8, %v79_v11  ;;  %s651_s8 = sld [smem:[#allocation3 + $0x102]]  ;;  %s653_s9 = sld [smem:[#allocation3 + $0x103]] }
  0x2e   :  { %v61_v14 = vld [vmem:[%s60_s0] sm:$0x1]  ;;  %s655_s10 = sld [smem:[#allocation3 + $0x104]]  ;;  %s65_s11 = scalar_lea.vmem [#allocation4], %s626_s14 }
  0x2f   :  { %v93_v16 = vld [vmem:[%s92_s6] sm:$0x1]  ;;  %v57_v17 = vadd.f32 %v56_v10, %v52_v13  ;;  %v89_v18 = vadd.f32 %v88_v12, %v84_v15  ;;  %s658_s12 = sld [smem:[#allocation3 + $0x105]]  ;;  %s660_s13 = sld [smem:[#allocation3 + $0x106]] }
  0x30   :  { %v66_v19 = vld [vmem:[%s65_s11] sm:$0x1]  ;;  %s662_s16 = sld [smem:[#allocation3 + $0x107]]  ;;  %s70_s17 = scalar_lea.vmem [#allocation4], %s628_s15 }
  0x31   :  { %v62_v20 = vadd.f32 %v61_v14, %v57_v17  ;;  %v94_v21 = vadd.f32 %v93_v16, %v89_v18  ;;  %v71_v22 = vld [vmem:[%s70_s17] sm:$0x1]  ;;  %s97_s18 = scalar_lea.vmem [#allocation4], %s639_s27  ;;  %s102_s19 = scalar_lea.vmem [#allocation4], %s641_s29 }
  0x32   :  { %v98_v23 = vld [vmem:[%s97_s18] sm:$0x1]  ;;  %s107_s14 = scalar_lea.vmem [#allocation4], %s643_s30  ;;  %s119_s20 = scalar_lea.vmem [#allocation4], %s462_s5 }
  0x33   :  { %v67_v24 = vadd.f32 %v66_v19, %v62_v20  ;;  %v99_v25 = vadd.f32 %v98_v23, %v94_v21  ;;  %v103_v26 = vld [vmem:[%s102_s19] sm:$0x1]  ;;  %s124_s1 = scalar_lea.vmem [#allocation4], %s649_s7  ;;  %s112_s15 = scalar_lea.vmem [#allocation4], %s646_s4 }
  0x34   :  { %v108_v27 = vld [vmem:[%s107_s14] sm:$0x1]  ;;  %s129_s21 = scalar_lea.vmem [#allocation4], %s651_s8  ;;  %s134_s22 = scalar_lea.vmem [#allocation4], %s653_s9 }
  0x35   :  { %v120_v28 = vld [vmem:[%s119_s20] sm:$0x1]  ;;  %v72_v29 = vadd.f32 %v71_v22, %v67_v24  ;;  %v104_v30 = vadd.f32 %v103_v26, %v99_v25  ;;  %s470_s23 = sld [smem:[#allocation3 + $0x180]]  ;;  %s471_s24 = sld [smem:[#allocation3 + $0x181]] }
  0x36   :  { %v121_v31 = vadd.f32 %v120_v28, %v635_v0  ;;  %v125_v32 = vld [vmem:[%s124_s1] sm:$0x1]  ;;  %s673_s25 = sld [smem:[#allocation3 + $0x182]]  ;;  %s675_s26 = sld [smem:[#allocation3 + $0x183]] }
  0x37   :  { %v113_v33 = vld [vmem:[%s112_s15] sm:$0x1]  ;;  %73 = vst [vmem:[#allocation7] sm:$0x1] %v72_v29  ;;  %v109_v35 = vadd.f32 %v108_v27, %v104_v30  ;;  %s139_s2 = scalar_lea.vmem [#allocation4], %s655_s10  ;;  %s678_s27 = sld [smem:[#allocation3 + $0x184]] }
  0x38   :  { %v130_v34 = vld [vmem:[%s129_s21] sm:$0x1]  ;;  %v126_v36 = vadd.f32 %v125_v32, %v121_v31  ;;  %s680_s28 = sld [smem:[#allocation3 + $0x185]]  ;;  %s682_s29 = sld [smem:[#allocation3 + $0x186]] }
  0x39   :  { %v135_v37 = vld [vmem:[%s134_s22] sm:$0x1]  ;;  %v114_v38 = vadd.f32 %v113_v33, %v109_v35  ;;  %s684_s30 = sld [smem:[#allocation3 + $0x187]]  ;;  %s144_s0 = scalar_lea.vmem [#allocation4], %s658_s12 }
  0x3a   :  { %v131_v39 = vadd.f32 %v130_v34, %v126_v36  ;;  %v140_v40 = vld [vmem:[%s139_s2] sm:$0x1]  ;;  %s478_s4 = sld [smem:[#allocation3 + $0x200]]  ;;  %s479_s5 = sld [smem:[#allocation3 + $0x201]] }
  0x3b   :  { %115 = vst [vmem:[#allocation7 + $0x1] sm:$0x1] %v114_v38  ;;  %v145_v42 = vld [vmem:[%s144_s0] sm:$0x1]  ;;  %s687_s6 = sld [smem:[#allocation3 + $0x202]]  ;;  %s689_s7 = sld [smem:[#allocation3 + $0x203]] }
  0x3c   :  { %v136_v41 = vadd.f32 %v135_v37, %v131_v39  ;;  %s149_s8 = scalar_lea.vmem [#allocation4], %s660_s13  ;;  %s161_s9 = scalar_lea.vmem [#allocation4], %s470_s23 }
  0x3d   :  { %v150_v44 = vld [vmem:[%s149_s8] sm:$0x1]  ;;  %s166_s10 = scalar_lea.vmem [#allocation4], %s471_s24  ;;  %s154_s11 = scalar_lea.vmem [#allocation4], %s662_s16 }
  0x3e   :  { %v141_v43 = vadd.f32 %v140_v40, %v136_v41  ;;  %v162_v46 = vld [vmem:[%s161_s9] sm:$0x1]  ;;  %s171_s12 = scalar_lea.vmem [#allocation4], %s673_s25  ;;  %s176_s17 = scalar_lea.vmem [#allocation4], %s675_s26 }
  0x3f   :  { %v167_v47 = vld [vmem:[%s166_s10] sm:$0x1]  ;;  %v163_v49 = vadd.f32 %v162_v46, %v635_v0  ;;  %s181_s19 = scalar_lea.vmem [#allocation4], %s678_s27  ;;  %s698_s16 = sld [smem:[#allocation3 + $0x204]] }
  0x40   :  { %v146_v45 = vadd.f32 %v145_v42, %v141_v43  ;;  %v155_v48 = vld [vmem:[%s154_s11] sm:$0x1]  ;;  %s203_s13 = scalar_lea.vmem [#allocation4], %s478_s4  ;;  %s208_s18 = scalar_lea.vmem [#allocation4], %s479_s5 }
  0x41   :  { %v172_v51 = vld [vmem:[%s171_s12] sm:$0x1]  ;;  %v168_v52 = vadd.f32 %v167_v47, %v163_v49  ;;  %s213_s14 = scalar_lea.vmem [#allocation4], %s687_s6  ;;  %s701_s20 = sld [smem:[#allocation3 + $0x205]] }
  0x42   :  { %v151_v50 = vadd.f32 %v150_v44, %v146_v45  ;;  %v177_v53 = vld [vmem:[%s176_s17] sm:$0x1]  ;;  %s703_s1 = sld [smem:[#allocation3 + $0x206]]  ;;  %s186_s15 = scalar_lea.vmem [#allocation4], %s680_s28 }
  0x43   :  { %v204_v55 = vld [vmem:[%s203_s13] sm:$0x1]  ;;  %v173_v57 = vadd.f32 %v172_v51, %v168_v52  ;;  %s706_s21 = sld [smem:[#allocation3 + $0x207]]  ;;  %s486_s22 = sld [smem:[#allocation3 + $0x280]] }
  0x44   :  { %v156_v54 = vadd.f32 %v155_v48, %v151_v50  ;;  %v209_v56 = vld [vmem:[%s208_s18] sm:$0x1]  ;;  %v205_v59 = vadd.f32 %v204_v55, %v635_v0  ;;  %s218_s23 = scalar_lea.vmem [#allocation4], %s689_s7  ;;  %s709_s24 = sld [smem:[#allocation3 + $0x281]] }
  0x45   :  { %v182_v58 = vld [vmem:[%s181_s19] sm:$0x1]  ;;  %v178_v61 = vadd.f32 %v177_v53, %v173_v57  ;;  %s711_s25 = sld [smem:[#allocation3 + $0x282]]  ;;  %s713_s26 = sld [smem:[#allocation3 + $0x283]] }
  0x46   :  { %157 = vst [vmem:[#allocation7 + $0x2] sm:$0x1] %v156_v54  ;;  %v214_v60 = vld [vmem:[%s213_s14] sm:$0x1]  ;;  %v210_v63 = vadd.f32 %v209_v56, %v205_v59  ;;  %s715_s2 = sld [smem:[#allocation3 + $0x284]]  ;;  %s191_s27 = scalar_lea.vmem [#allocation4], %s682_s29 }
  0x47   :  { %v187_v62 = vld [vmem:[%s186_s15] sm:$0x1]  ;;  %v183_v2 = vadd.f32 %v182_v58, %v178_v61  ;;  %s718_s28 = sld [smem:[#allocation3 + $0x285]]  ;;  %s720_s0 = sld [smem:[#allocation3 + $0x286]] }
  0x48   :  { %v219_v1 = vld [vmem:[%s218_s23] sm:$0x1]  ;;  %v215_v3 = vadd.f32 %v214_v60, %v210_v63  ;;  %s722_s4 = sld [smem:[#allocation3 + $0x287]]  ;;  %s196_s5 = scalar_lea.vmem [#allocation4], %s684_s30 }
  0x49   :  { %v192_v4 = vld [vmem:[%s191_s27] sm:$0x1]  ;;  %v188_v5 = vadd.f32 %v187_v62, %v183_v2  ;;  %s223_s6 = scalar_lea.vmem [#allocation4], %s698_s16  ;;  %s228_s7 = scalar_lea.vmem [#allocation4], %s701_s20 }
  0x4a   :  { %v220_v6 = vadd.f32 %v219_v1, %v215_v3  ;;  %v197_v7 = vld [vmem:[%s196_s5] sm:$0x1]  ;;  %s233_s29 = scalar_lea.vmem [#allocation4], %s703_s1  ;;  %s245_s8 = scalar_lea.vmem [#allocation4], %s486_s22 }
  0x4b   :  { %v224_v8 = vld [vmem:[%s223_s6] sm:$0x1]  ;;  %v193_v9 = vadd.f32 %v192_v4, %v188_v5  ;;  %s250_s9 = scalar_lea.vmem [#allocation4], %s709_s24  ;;  %s238_s30 = scalar_lea.vmem [#allocation4], %s706_s21 }
  0x4c   :  { %v225_v10 = vadd.f32 %v224_v8, %v220_v6  ;;  %v229_v11 = vld [vmem:[%s228_s7] sm:$0x1]  ;;  %s255_s10 = scalar_lea.vmem [#allocation4], %s711_s25  ;;  %s260_s11 = scalar_lea.vmem [#allocation4], %s713_s26 }
  0x4d   :  { %v234_v12 = vld [vmem:[%s233_s29] sm:$0x1]  ;;  %v198_v14 = vadd.f32 %v197_v7, %v193_v9  ;;  %s494_s12 = sld [smem:[#allocation3 + $0x300]]  ;;  %s495_s17 = sld [smem:[#allocation3 + $0x301]] }
  0x4e   :  { %v246_v13 = vld [vmem:[%s245_s8] sm:$0x1]  ;;  %v230_v15 = vadd.f32 %v229_v11, %v225_v10  ;;  %s733_s13 = sld [smem:[#allocation3 + $0x302]]  ;;  %s735_s18 = sld [smem:[#allocation3 + $0x303]] }
  0x4f   :  { %v247_v16 = vadd.f32 %v246_v13, %v635_v0  ;;  %v251_v17 = vld [vmem:[%s250_s9] sm:$0x1]  ;;  %199 = vst [vmem:[#allocation7 + $0x3] sm:$0x1] %v198_v14  ;;  %s265_s19 = scalar_lea.vmem [#allocation4], %s715_s2  ;;  %s738_s16 = sld [smem:[#allocation3 + $0x304]] }
  0x50   :  { %v239_v18 = vld [vmem:[%s238_s30] sm:$0x1]  ;;  %v235_v20 = vadd.f32 %v234_v12, %v230_v15  ;;  %s740_s14 = sld [smem:[#allocation3 + $0x305]]  ;;  %s742_s20 = sld [smem:[#allocation3 + $0x306]] }
  0x51   :  { %v256_v19 = vld [vmem:[%s255_s10] sm:$0x1]  ;;  %v252_v21 = vadd.f32 %v251_v17, %v247_v16  ;;  %s270_s1 = scalar_lea.vmem [#allocation4], %s718_s28  ;;  %s502_s15 = sld [smem:[#allocation3 + $0x380]] }
  0x52   :  { %v261_v22 = vld [vmem:[%s260_s11] sm:$0x1]  ;;  %v240_v23 = vadd.f32 %v239_v18, %v235_v20  ;;  %s503_s21 = sld [smem:[#allocation3 + $0x381]]  ;;  %s745_s22 = sld [smem:[#allocation3 + $0x382]] }
  0x53   :  { %v257_v24 = vadd.f32 %v256_v19, %v252_v21  ;;  %v266_v25 = vld [vmem:[%s265_s19] sm:$0x1]  ;;  %s747_s23 = sld [smem:[#allocation3 + $0x383]]  ;;  %s275_s24 = scalar_lea.vmem [#allocation4], %s720_s0 }
  0x54   :  { %241 = vst [vmem:[#allocation7 + $0x4] sm:$0x1] %v240_v23  ;;  %v271_v27 = vld [vmem:[%s270_s1] sm:$0x1]  ;;  %s287_s25 = scalar_lea.vmem [#allocation4], %s494_s12  ;;  %s292_s26 = scalar_lea.vmem [#allocation4], %s495_s17 }
  0x55   :  { %v262_v26 = vadd.f32 %v261_v22, %v257_v24  ;;  %v276_v29 = vld [vmem:[%s275_s24] sm:$0x1]  ;;  %s280_s2 = scalar_lea.vmem [#allocation4], %s722_s4  ;;  %s752_s27 = sld [smem:[#allocation3 + $0x307]] }
  0x56   :  { %v288_v31 = vld [vmem:[%s287_s25] sm:$0x1]  ;;  %s297_s28 = scalar_lea.vmem [#allocation4], %s733_s13  ;;  %s302_s5 = scalar_lea.vmem [#allocation4], %s735_s18 }
  0x57   :  { %v267_v28 = vadd.f32 %v266_v25, %v262_v26  ;;  %v293_v32 = vld [vmem:[%s292_s26] sm:$0x1]  ;;  %v289_v34 = vadd.f32 %v288_v31, %v635_v0  ;;  %s329_s0 = scalar_lea.vmem [#allocation4], %s502_s15  ;;  %s307_s4 = scalar_lea.vmem [#allocation4], %s738_s16 }
  0x58   :  { %v281_v33 = vld [vmem:[%s280_s2] sm:$0x1]  ;;  %s334_s6 = scalar_lea.vmem [#allocation4], %s503_s21  ;;  %s506_s7 = sld [smem:[#allocation3 + $0x384]] }
  0x59   :  { %v272_v30 = vadd.f32 %v271_v27, %v267_v28  ;;  %v298_v36 = vld [vmem:[%s297_s28] sm:$0x1]  ;;  %v294_v37 = vadd.f32 %v293_v32, %v289_v34  ;;  %s339_s29 = scalar_lea.vmem [#allocation4], %s745_s22  ;;  %s507_s8 = sld [smem:[#allocation3 + $0x385]] }
  0x5a   :  { %v303_v38 = vld [vmem:[%s302_s5] sm:$0x1]  ;;  %s508_s9 = sld [smem:[#allocation3 + $0x386]]  ;;  %s509_s30 = sld [smem:[#allocation3 + $0x387]] }
  0x5b   :  { %v277_v35 = vadd.f32 %v276_v29, %v272_v30  ;;  %v330_v40 = vld [vmem:[%s329_s0] sm:$0x1]  ;;  %v299_v42 = vadd.f32 %v298_v36, %v294_v37  ;;  %s312_s10 = scalar_lea.vmem [#allocation4], %s740_s14  ;;  %s344_s11 = scalar_lea.vmem [#allocation4], %s747_s23 }
  0x5c   :  { %v335_v41 = vld [vmem:[%s334_s6] sm:$0x1]  ;;  %v331_v44 = vadd.f32 %v330_v40, %v635_v0  ;;  %s317_s12 = scalar_lea.vmem [#allocation4], %s742_s20  ;;  %s322_s17 = scalar_lea.vmem [#allocation4], %s752_s27 }
  0x5d   :  { %v282_v39 = vadd.f32 %v281_v33, %v277_v35  ;;  %v308_v43 = vld [vmem:[%s307_s4] sm:$0x1]  ;;  %v304_v46 = vadd.f32 %v303_v38, %v299_v42  ;;  %s579_s14 = smov [#allocation7]  }
  0x5e   :  { %v340_v45 = vld [vmem:[%s339_s29] sm:$0x1]  ;;  %v336_v47 = vadd.f32 %v335_v41, %v331_v44  ;;  %s349_s13 = scalar_lea.vmem [#allocation4], %s506_s7  ;;  %s374_s1 = sshll.u32 %s579_s14, 4  ;;  %s375_s1 = int_to_ptr.vmem [resolvable:$true] %s374_s1 }
  0x5f   :  { %283 = vst [vmem:[#allocation7 + $0x5] sm:$0x1] %v282_v39  ;;  %v313_v48 = vld [vmem:[%s312_s10] sm:$0x1]  ;;  %v309_v50 = vadd.f32 %v308_v43, %v304_v46  ;;  %s354_s18 = scalar_lea.vmem [#allocation4], %s507_s8  ;;  %s547_s20 = scalar_lea.vmem %s375_s1, 128 }
  0x60   :  { %v345_v49 = vld [vmem:[%s344_s11] sm:$0x1]  ;;  %v341_v51 = vadd.f32 %v340_v45, %v336_v47  ;;  %s359_s19 = scalar_lea.vmem [#allocation4], %s508_s9  ;;  %s364_s16 = scalar_lea.vmem [#allocation4], %s509_s30 }
  0x61   :  { %v318_v52 = vld [vmem:[%s317_s12] sm:$0x1]  ;;  %v314_v0 = vadd.f32 %v313_v48, %v309_v50  ;;  %p548_p11 = scmp.ne.s32.totalorder %s375_s1, %s547_s20  ;;  %p552_p12 = scmp.lt.s32.totalorder %s375_s1, %s375_s1 }
  0x62   :  { %v346_v53 = vadd.f32 %v345_v49, %v341_v51  ;;  %v323_v54 = vld [vmem:[%s322_s17] sm:$0x1]  ;;  %p553_p13 = scmp.lt.s32.totalorder %s547_s20, %s547_s20 }
  0x63   :  { %v350_v55 = vld [vmem:[%s349_s13] sm:$0x1]  ;;  %v319_v56 = vadd.f32 %v318_v52, %v314_v0 }
  0x64   :  { %v351_v57 = vadd.f32 %v350_v55, %v346_v53  ;;  %v355_v58 = vld [vmem:[%s354_s18] sm:$0x1]  ;;  %p554_p0 = por %p553_p13, %p552_p12 }
  0x65   :  { %v360_v59 = vld [vmem:[%s359_s19] sm:$0x1]  ;;  %v324_v60 = vadd.f32 %v323_v54, %v319_v56 }
  0x66   :  { %v356_v61 = vadd.f32 %v355_v58, %v351_v57  ;;  %v365_v62 = vld [vmem:[%s364_s16] sm:$0x1]  ;;  %p555_p1 = pnand %p554_p0, %p548_p11 }
  0x67   :  { %325 = vst [vmem:[#allocation7 + $0x6] sm:$0x1] %v324_v60 }
  0x68   :  { %v361_v63 = vadd.f32 %v360_v59, %v356_v61 }
  0x6a   :  { %v366_v1 = vadd.f32 %v365_v62, %v361_v63 }
  0x6c   :  { %367 = vst [vmem:[#allocation7 + $0x7] sm:$0x1] %v366_v1 }
  0x6d   :  { %558 = shalt.err (!%p555_p1)
}
  0x6e   :  { %s559_s22 = scalar_lea.hbm %s778_s3, 128 }
  0x6f   :  { %p560_p2 = scmp.ne.s32.totalorder %s778_s3, %s559_s22  ;;  %p563_p3 = scmp.lt.u32.totalorder %s559_s22, %s778_s3 }
  0x71   :  { %p565_p4 = pnand %p563_p3, %p560_p2 }
  0x73   :  { %568 = shalt.err (!%p565_p4)
}
  0x74   :  { %377 = dma.vmem_to_hbm [thread:$0]  %s375_s1, 128, %s778_s3, [#allocation6]  }
  0x75   :  { %573 = dma.done.wait [#allocation6], 128  }
  0x76   :  { %574 = vsyncadd [#allocation6], 4294967168 }
  0x77   :  { %381 = vsyncpa [#allocation5], 1 }
  0x78   :  { %382 = vsyncpa [#allocation6], 1 }

</bundles_post_ra>
